<compile_context>
chip_gen: v7x
topology: tpu7x:2x2x1
jax: 0.10.0
libtpu: 0.0.40
codegen_flags: <defaults>
</compile_context>

<pallas_src>
import functools

import jax
import jax.numpy as jnp
from jax import lax
from jax.experimental import pallas as pl
from jax.experimental.pallas import tpu as pltpu


def rnn_recurrence_kernel(xw_ref, whh_ref, wfc_ref, bfc_ref, out_ref, h_scratch,
                          *, seq, tc, needs_mask, unroll):
    """One grid step = one (batch_block, time_chunk).

    xw_ref : (tc, bb, hidden)   precomputed x @ W_ih^T + (b_ih + b_hh) for this chunk
    whh_ref: (hidden, hidden)   W_hh^T (resident across the grid)
    wfc_ref: (hidden, out)      W_fc^T (resident across the grid)
    bfc_ref: (1, out)           final Linear bias
    out_ref: (bb, out)          written only on the last time chunk
    h_scratch: (bb, hidden)     hidden state carried across time chunks
    """
    c = pl.program_id(1)                       # time-chunk index (last, sequential axis)

    @pl.when(c == 0)
    def _():
        h_scratch[...] = jnp.zeros_like(h_scratch)

    whh = whh_ref[...]                         # hoist resident weight load out of the loop
    base = c * tc

    def step(i, h):
        pre = xw_ref[i] + jnp.dot(h, whh, preferred_element_type=jnp.float32)
        h_new = jnp.tanh(pre)
        if needs_mask:                         # static flag: only if seq was padded up to Tc
            h_new = jnp.where(base + i < seq, h_new, h)
        return h_new

    h_fin = lax.fori_loop(0, tc, step, h_scratch[...], unroll=unroll)
    h_scratch[...] = h_fin

    @pl.when(c == pl.num_programs(1) - 1)
    def _():
        out_ref[...] = (jnp.dot(h_fin, wfc_ref[...], preferred_element_type=jnp.float32)
                        + bfc_ref[...])


def rnn_forward(text, params, *, time_chunk=None):
    """text: (batch, seq) int32.  Returns (batch, output_dim) float32."""
    emb_table = params["embedding"]          # (vocab, emb)
    w_ih = params["w_ih"]                    # (hidden, emb)   (PyTorch layout)
    w_hh = params["w_hh"]                    # (hidden, hidden)
    b_ih = params["b_ih"]                    # (hidden,)
    b_hh = params["b_hh"]                    # (hidden,)
    w_fc = params["w_fc"]                    # (out, hidden)
    b_fc = params["b_fc"]                    # (out,)

    batch, seq = text.shape
    emb_dim = emb_table.shape[1]
    hidden = w_hh.shape[0]
    out_dim = w_fc.shape[0]

    # ---- Hoisted input projection: one large batched matmul, off the serial path ----
    # Gather embeddings directly in time-major order (seq, batch, emb): no HBM transpose of
    # the big activation tensor.
    # TODO(synk): the embedding gather itself stays in JAX glue (data-dependent row gather
    # has no rectangular BlockSpec equivalent; a DMA-gather kernel is overkill here).
    x_tm = jnp.take(emb_table, text.T, axis=0)                        # (seq, batch, emb)
    bias = (b_ih + b_hh).astype(jnp.float32)                          # fused recurrent biases
    xw = jnp.dot(x_tm.reshape(seq * batch, emb_dim), w_ih.T) + bias
    xw = xw.reshape(seq, batch, hidden).astype(jnp.float32)           # (seq, batch, hidden)

    # ---- Batch blocking: shard across TensorCores when batch is tile-friendly ----
    bb = batch // 2 if (batch >= 16 and batch % 16 == 0) else batch
    num_bblocks = batch // bb

    # ---- Time chunking: amortize per-grid-step overhead, stay VMEM-safe on every gen ----
    if time_chunk is None:
        bytes_per_step = bb * hidden * 4
        tc_cap = max(1, (8 * 1024 * 1024) // (2 * bytes_per_step))    # dbl-buffered slab <= 8 MiB
        time_chunk = min(seq, 256, tc_cap)
    tc = max(1, int(time_chunk))
    num_chunks = int(pl.cdiv(seq, tc))
    seq_pad = num_chunks * tc
    needs_mask = seq_pad != seq
    if needs_mask:
        xw = jnp.pad(xw, ((0, seq_pad - seq), (0, 0), (0, 0)))
    unroll = tc if tc <= 16 else 8

    kernel = functools.partial(rnn_recurrence_kernel, seq=seq, tc=tc,
                               needs_mask=needs_mask, unroll=unroll)

    out = pl.pallas_call(
        kernel,
        out_shape=jax.ShapeDtypeStruct((batch, out_dim), jnp.float32),
        grid_spec=pltpu.PrefetchScalarGridSpec(
            num_scalar_prefetch=0,
            grid=(num_bblocks, num_chunks),
            in_specs=[
                pl.BlockSpec((tc, bb, hidden), lambda b, c: (c, b, 0)),   # streamed xW slab
                pl.BlockSpec((hidden, hidden), lambda b, c: (0, 0)),      # W_hh^T (resident)
                pl.BlockSpec((hidden, out_dim), lambda b, c: (0, 0)),     # W_fc^T (resident)
                pl.BlockSpec((1, out_dim), lambda b, c: (0, 0)),          # b_fc
            ],
            out_specs=pl.BlockSpec((bb, out_dim), lambda b, c: (b, 0)),
            scratch_shapes=[pltpu.VMEM((bb, hidden), jnp.float32)],
        ),
        compiler_params=pltpu.CompilerParams(
            dimension_semantics=("parallel", "arbitrary"),
            vmem_limit_bytes=32 * 1024 * 1024,
        ),
    )(xw, w_hh.T, w_fc.T, b_fc.reshape(1, out_dim))
    return out


def reference_forward(text, params):
    """Pure-JAX reference matching the PyTorch module (for correctness checking)."""
    emb = jnp.take(params["embedding"], text, axis=0)                 # (batch, seq, emb)
    w_ih, w_hh = params["w_ih"], params["w_hh"]
    b_ih, b_hh = params["b_ih"], params["b_hh"]
    h0 = jnp.zeros((text.shape[0], w_hh.shape[0]), jnp.float32)

    def step(h, x_t):
        h = jnp.tanh(x_t @ w_ih.T + b_ih + h @ w_hh.T + b_hh)
        return h, None

    h_fin, _ = lax.scan(step, h0, jnp.transpose(emb, (1, 0, 2)))
    return h_fin @ params["w_fc"].T + params["b_fc"]


def init_params(key, vocab_size, embedding_dim, hidden_dim, output_dim):
    ks = jax.random.split(key, 7)
    s = 0.1
    return {
        "embedding": jax.random.normal(ks[0], (vocab_size, embedding_dim), jnp.float32) * s,
        "w_ih": jax.random.normal(ks[1], (hidden_dim, embedding_dim), jnp.float32) * s,
        "w_hh": jax.random.normal(ks[2], (hidden_dim, hidden_dim), jnp.float32) * s,
        "b_ih": jax.random.normal(ks[3], (hidden_dim,), jnp.float32) * s,
        "b_hh": jax.random.normal(ks[4], (hidden_dim,), jnp.float32) * s,
        "w_fc": jax.random.normal(ks[5], (output_dim, hidden_dim), jnp.float32) * s,
        "b_fc": jax.random.normal(ks[6], (output_dim,), jnp.float32) * s,
    }


if __name__ == "__main__":
    vocab_size, embedding_dim, hidden_dim, output_dim = 16, 32, 32, 4
    batch, seq = 2, 8

    key = jax.random.PRNGKey(0)
    pkey, tkey = jax.random.split(key)
    params = init_params(pkey, vocab_size, embedding_dim, hidden_dim, output_dim)
    text = jax.random.randint(tkey, (batch, seq), 0, vocab_size, dtype=jnp.int32)

    out = rnn_forward(text, params)
    jax.block_until_ready(out)
    assert out.shape == (batch, output_dim)

    ref = reference_forward(text, params)
    assert jnp.allclose(out, ref, atol=2e-3, rtol=2e-3), "mismatch vs pure-JAX reference"

    print("KERNEL_OK")
</pallas_src>

<mosaic_0001>
module attributes {stable_mosaic.version = 11 : i64} {
  func.func @rnn_recurrence_kernel(%arg0: i32, %arg1: i32, %arg2: memref<8x2x32xf32, #tpu.memory_space<vmem>>, %arg3: memref<32x32xf32, #tpu.memory_space<vmem>>, %arg4: memref<32x4xf32, #tpu.memory_space<vmem>>, %arg5: memref<1x4xf32, #tpu.memory_space<vmem>>, %arg6: memref<2x4xf32, #tpu.memory_space<vmem>>, %arg7: memref<2x32xf32, #tpu.memory_space<vmem>>) attributes {dimension_semantics = [#tpu.dimension_semantics<parallel>, #tpu.dimension_semantics<arbitrary>], iteration_bounds = array<i64: 1, 1>, scalar_prefetch = 0 : i64, scratch_operands = 1 : i64, tpu.core_type = #tpu.core_type<tc>, window_params = [{transform_indices = @transform_0, window_bounds = array<i64: 8, 2, 32>}, {pipeline_mode = #tpu.pipeline_mode<synchronous>, transform_indices = @transform_1, window_bounds = array<i64: 32, 32>}, {pipeline_mode = #tpu.pipeline_mode<synchronous>, transform_indices = @transform_2, window_bounds = array<i64: 32, 4>}, {pipeline_mode = #tpu.pipeline_mode<synchronous>, transform_indices = @transform_3, window_bounds = array<i64: 1, 4>}, {transform_indices = @transform_4, window_bounds = array<i64: 2, 4>}]} {
    %c0_i32 = arith.constant 0 : i32
    %0 = arith.cmpi eq, %arg1, %c0_i32 : i32
    %1 = arith.extui %0 : i1 to i32
    %c0_i32_0 = arith.constant 0 : i32
    %2 = arith.cmpi ne, %1, %c0_i32_0 : i32
    scf.if %2 {
      %cst_32 = arith.constant 0.000000e+00 : f32
      %57 = vector.broadcast %cst_32 : f32 to vector<2x32xf32>
      %c0_33 = arith.constant 0 : index
      %c0_34 = arith.constant 0 : index
      %58 = vector.load %arg7[%c0_33, %c0_34] : memref<2x32xf32, #tpu.memory_space<vmem>>, vector<2x32xf32>
      tpu.vector_store %arg7[%c0_33, %c0_34], %57 {strides = array<i32>} : memref<2x32xf32, #tpu.memory_space<vmem>>, vector<2x32xf32>,
    } else {
    }
    %c0 = arith.constant 0 : index
    %c0_1 = arith.constant 0 : index
    %3 = vector.load %arg3[%c0, %c0_1] : memref<32x32xf32, #tpu.memory_space<vmem>>, vector<32x32xf32>
    %c0_2 = arith.constant 0 : index
    %c0_3 = arith.constant 0 : index
    %4 = vector.load %arg7[%c0_2, %c0_3] : memref<2x32xf32, #tpu.memory_space<vmem>>, vector<2x32xf32>
    %c0_i32_4 = arith.constant 0 : i32
    %5 = arith.index_cast %c0_i32_4 : i32 to index
    %c0_5 = arith.constant 0 : index
    %c0_6 = arith.constant 0 : index
    %6 = vector.load %arg2[%5, %c0_5, %c0_6] : memref<8x2x32xf32, #tpu.memory_space<vmem>>, vector<1x2x32xf32>
    %7 = vector.shape_cast %6 : vector<1x2x32xf32> to vector<2x32xf32>
    %cst = arith.constant dense<0.000000e+00> : vector<2x32xf32>
    %8 = tpu.matmul %4, %3, %cst {dimension_numbers = #tpu.dot_dimension_numbers<[1], [0], [0], [1], [0, 0, 1, 1], [], []>} : vector<2x32xf32>, vector<32x32xf32>, vector<2x32xf32> -> vector<2x32xf32>
    %9 = arith.addf %7, %8 : vector<2x32xf32>
    %10 = math.tanh %9 : vector<2x32xf32>
    %c1_i32 = arith.constant 1 : i32
    %11 = arith.index_cast %c1_i32 : i32 to index
    %c0_7 = arith.constant 0 : index
    %c0_8 = arith.constant 0 : index
    %12 = vector.load %arg2[%11, %c0_7, %c0_8] : memref<8x2x32xf32, #tpu.memory_space<vmem>>, vector<1x2x32xf32>
    %13 = vector.shape_cast %12 : vector<1x2x32xf32> to vector<2x32xf32>
    %cst_9 = arith.constant dense<0.000000e+00> : vector<2x32xf32>
    %14 = tpu.matmul %10, %3, %cst_9 {dimension_numbers = #tpu.dot_dimension_numbers<[1], [0], [0], [1], [0, 0, 1, 1], [], []>} : vector<2x32xf32>, vector<32x32xf32>, vector<2x32xf32> -> vector<2x32xf32>
    %15 = arith.addf %13, %14 : vector<2x32xf32>
    %16 = math.tanh %15 : vector<2x32xf32>
    %c2_i32 = arith.constant 2 : i32
    %17 = arith.index_cast %c2_i32 : i32 to index
    %c0_10 = arith.constant 0 : index
    %c0_11 = arith.constant 0 : index
    %18 = vector.load %arg2[%17, %c0_10, %c0_11] : memref<8x2x32xf32, #tpu.memory_space<vmem>>, vector<1x2x32xf32>
    %19 = vector.shape_cast %18 : vector<1x2x32xf32> to vector<2x32xf32>
    %cst_12 = arith.constant dense<0.000000e+00> : vector<2x32xf32>
    %20 = tpu.matmul %16, %3, %cst_12 {dimension_numbers = #tpu.dot_dimension_numbers<[1], [0], [0], [1], [0, 0, 1, 1], [], []>} : vector<2x32xf32>, vector<32x32xf32>, vector<2x32xf32> -> vector<2x32xf32>
    %21 = arith.addf %19, %20 : vector<2x32xf32>
    %22 = math.tanh %21 : vector<2x32xf32>
    %c3_i32 = arith.constant 3 : i32
    %23 = arith.index_cast %c3_i32 : i32 to index
    %c0_13 = arith.constant 0 : index
    %c0_14 = arith.constant 0 : index
    %24 = vector.load %arg2[%23, %c0_13, %c0_14] : memref<8x2x32xf32, #tpu.memory_space<vmem>>, vector<1x2x32xf32>
    %25 = vector.shape_cast %24 : vector<1x2x32xf32> to vector<2x32xf32>
    %cst_15 = arith.constant dense<0.000000e+00> : vector<2x32xf32>
    %26 = tpu.matmul %22, %3, %cst_15 {dimension_numbers = #tpu.dot_dimension_numbers<[1], [0], [0], [1], [0, 0, 1, 1], [], []>} : vector<2x32xf32>, vector<32x32xf32>, vector<2x32xf32> -> vector<2x32xf32>
    %27 = arith.addf %25, %26 : vector<2x32xf32>
    %28 = math.tanh %27 : vector<2x32xf32>
    %c4_i32 = arith.constant 4 : i32
    %29 = arith.index_cast %c4_i32 : i32 to index
    %c0_16 = arith.constant 0 : index
    %c0_17 = arith.constant 0 : index
    %30 = vector.load %arg2[%29, %c0_16, %c0_17] : memref<8x2x32xf32, #tpu.memory_space<vmem>>, vector<1x2x32xf32>
    %31 = vector.shape_cast %30 : vector<1x2x32xf32> to vector<2x32xf32>
    %cst_18 = arith.constant dense<0.000000e+00> : vector<2x32xf32>
    %32 = tpu.matmul %28, %3, %cst_18 {dimension_numbers = #tpu.dot_dimension_numbers<[1], [0], [0], [1], [0, 0, 1, 1], [], []>} : vector<2x32xf32>, vector<32x32xf32>, vector<2x32xf32> -> vector<2x32xf32>
    %33 = arith.addf %31, %32 : vector<2x32xf32>
    %34 = math.tanh %33 : vector<2x32xf32>
    %c5_i32 = arith.constant 5 : i32
    %35 = arith.index_cast %c5_i32 : i32 to index
    %c0_19 = arith.constant 0 : index
    %c0_20 = arith.constant 0 : index
    %36 = vector.load %arg2[%35, %c0_19, %c0_20] : memref<8x2x32xf32, #tpu.memory_space<vmem>>, vector<1x2x32xf32>
    %37 = vector.shape_cast %36 : vector<1x2x32xf32> to vector<2x32xf32>
    %cst_21 = arith.constant dense<0.000000e+00> : vector<2x32xf32>
    %38 = tpu.matmul %34, %3, %cst_21 {dimension_numbers = #tpu.dot_dimension_numbers<[1], [0], [0], [1], [0, 0, 1, 1], [], []>} : vector<2x32xf32>, vector<32x32xf32>, vector<2x32xf32> -> vector<2x32xf32>
    %39 = arith.addf %37, %38 : vector<2x32xf32>
    %40 = math.tanh %39 : vector<2x32xf32>
    %c6_i32 = arith.constant 6 : i32
    %41 = arith.index_cast %c6_i32 : i32 to index
    %c0_22 = arith.constant 0 : index
    %c0_23 = arith.constant 0 : index
    %42 = vector.load %arg2[%41, %c0_22, %c0_23] : memref<8x2x32xf32, #tpu.memory_space<vmem>>, vector<1x2x32xf32>
    %43 = vector.shape_cast %42 : vector<1x2x32xf32> to vector<2x32xf32>
    %cst_24 = arith.constant dense<0.000000e+00> : vector<2x32xf32>
    %44 = tpu.matmul %40, %3, %cst_24 {dimension_numbers = #tpu.dot_dimension_numbers<[1], [0], [0], [1], [0, 0, 1, 1], [], []>} : vector<2x32xf32>, vector<32x32xf32>, vector<2x32xf32> -> vector<2x32xf32>
    %45 = arith.addf %43, %44 : vector<2x32xf32>
    %46 = math.tanh %45 : vector<2x32xf32>
    %c7_i32 = arith.constant 7 : i32
    %47 = arith.index_cast %c7_i32 : i32 to index
    %c0_25 = arith.constant 0 : index
    %c0_26 = arith.constant 0 : index
    %48 = vector.load %arg2[%47, %c0_25, %c0_26] : memref<8x2x32xf32, #tpu.memory_space<vmem>>, vector<1x2x32xf32>
    %49 = vector.shape_cast %48 : vector<1x2x32xf32> to vector<2x32xf32>
    %cst_27 = arith.constant dense<0.000000e+00> : vector<2x32xf32>
    %50 = tpu.matmul %46, %3, %cst_27 {dimension_numbers = #tpu.dot_dimension_numbers<[1], [0], [0], [1], [0, 0, 1, 1], [], []>} : vector<2x32xf32>, vector<32x32xf32>, vector<2x32xf32> -> vector<2x32xf32>
    %51 = arith.addf %49, %50 : vector<2x32xf32>
    %52 = math.tanh %51 : vector<2x32xf32>
    %c8_i32 = arith.constant 8 : i32
    %c0_28 = arith.constant 0 : index
    %c0_29 = arith.constant 0 : index
    %53 = vector.load %arg7[%c0_28, %c0_29] : memref<2x32xf32, #tpu.memory_space<vmem>>, vector<2x32xf32>
    tpu.vector_store %arg7[%c0_28, %c0_29], %52 {strides = array<i32>} : memref<2x32xf32, #tpu.memory_space<vmem>>, vector<2x32xf32>,
    %c0_i32_30 = arith.constant 0 : i32
    %54 = arith.cmpi eq, %arg1, %c0_i32_30 : i32
    %55 = arith.extui %54 : i1 to i32
    %c0_i32_31 = arith.constant 0 : i32
    %56 = arith.cmpi ne, %55, %c0_i32_31 : i32
    scf.if %56 {
      %c0_32 = arith.constant 0 : index
      %c0_33 = arith.constant 0 : index
      %57 = vector.load %arg4[%c0_32, %c0_33] : memref<32x4xf32, #tpu.memory_space<vmem>>, vector<32x4xf32>
      %cst_34 = arith.constant dense<0.000000e+00> : vector<2x4xf32>
      %58 = tpu.matmul %52, %57, %cst_34 {dimension_numbers = #tpu.dot_dimension_numbers<[1], [0], [0], [1], [0, 0, 1, 1], [], []>} : vector<2x32xf32>, vector<32x4xf32>, vector<2x4xf32> -> vector<2x4xf32>
      %c0_35 = arith.constant 0 : index
      %c0_36 = arith.constant 0 : index
      %59 = vector.load %arg5[%c0_35, %c0_36] : memref<1x4xf32, #tpu.memory_space<vmem>>, vector<1x4xf32>
      %60 = vector.broadcast %59 : vector<1x4xf32> to vector<2x4xf32>
      %61 = arith.addf %58, %60 : vector<2x4xf32>
      %c0_37 = arith.constant 0 : index
      %c0_38 = arith.constant 0 : index
      %62 = vector.load %arg6[%c0_37, %c0_38] : memref<2x4xf32, #tpu.memory_space<vmem>>, vector<2x4xf32>
      tpu.vector_store %arg6[%c0_37, %c0_38], %61 {strides = array<i32>} : memref<2x4xf32, #tpu.memory_space<vmem>>, vector<2x4xf32>,
    } else {
    }
    return
  }
  func.func @transform_0(%arg0: i32, %arg1: i32) -> (i32, i32, i32) {
    %c0_i32 = arith.constant 0 : i32
    %c0_i32_0 = arith.constant 0 : i32
    return %arg1, %arg0, %c0_i32 : i32, i32, i32
  }
  func.func @transform_1(%arg0: i32, %arg1: i32) -> (i32, i32) {
    %c0_i32 = arith.constant 0 : i32
    %c0_i32_0 = arith.constant 0 : i32
    %c0_i32_1 = arith.constant 0 : i32
    return %c0_i32, %c0_i32_0 : i32, i32
  }
  func.func @transform_2(%arg0: i32, %arg1: i32) -> (i32, i32) {
    %c0_i32 = arith.constant 0 : i32
    %c0_i32_0 = arith.constant 0 : i32
    %c0_i32_1 = arith.constant 0 : i32
    return %c0_i32, %c0_i32_0 : i32, i32
  }
  func.func @transform_3(%arg0: i32, %arg1: i32) -> (i32, i32) {
    %c0_i32 = arith.constant 0 : i32
    %c0_i32_0 = arith.constant 0 : i32
    %c0_i32_1 = arith.constant 0 : i32
    return %c0_i32, %c0_i32_0 : i32, i32
  }
  func.func @transform_4(%arg0: i32, %arg1: i32) -> (i32, i32) {
    %c0_i32 = arith.constant 0 : i32
    %c0_i32_0 = arith.constant 0 : i32
    return %arg0, %c0_i32 : i32, i32
  }
}

</mosaic_0001>

<bundles_post_ra>
// kernel: tpu_custom_call.1
= control target key start
LH: loop header
LB: loop body
LE: loop exit
PB: predicated region body
PF: predicated region fallthrough
CT: control target
= control target key end

     0   :  { %9 = vsyncpa [#allocation4], 0  ;;  %s1195_s0 = inlined_call_operand.hbm [shape: f32[8,2,32], index: 0, kind: input, shape index: {}]   ;;  %s1196_s1 = inlined_call_operand.vmem [shape: f32[32,32], index: 1, kind: input, shape index: {}]   ;;  %s1197_s2 = inlined_call_operand.vmem [shape: f32[32,4], index: 2, kind: input, shape index: {}]   ;;  %s1198_s3 = inlined_call_operand.vmem [shape: f32[1,4], index: 3, kind: input, shape index: {}]   ;;  %s1199_s4 = inlined_call_operand.hbm [shape: f32[2,4], index: 4, kind: output, shape index: {}]  }
   0x1   :  { %10 = vsyncpa [#allocation5], 0  ;;  %s1044_s15 = smov [#allocation3]   ;;  %s996_s19 = scalar_lea.hbm %s1195_s0, 256 }
   0x2   :  { %s16_s16 = sshll.u32 %s1044_s15, 4  ;;  %p997_p0 = scmp.ne.s32.totalorder %s1195_s0, %s996_s19  ;;  %s17_s16 = int_to_ptr.vmem [resolvable:$true] %s16_s16 }
   0x3   :  { %p1000_p1 = scmp.lt.u32.totalorder %s996_s19, %s1195_s0 }
   0x5   :  { %p1002_p2 = pnand %p1000_p1, %p997_p0 }
   0x7   :  { %1005 = shalt.err (!%p1002_p2)
}
   0x8   :  { %s1006_s24 = scalar_lea.vmem %s17_s16, 256  ;;  %p1011_p4 = scmp.lt.s32.totalorder %s17_s16, %s17_s16 }
   0x9   :  { %p1007_p3 = scmp.ne.s32.totalorder %s17_s16, %s1006_s24  ;;  %p1012_p5 = scmp.lt.s32.totalorder %s1006_s24, %s1006_s24 }
   0xb   :  { %p1013_p6 = por %p1012_p5, %p1011_p4 }
   0xd   :  { %p1014_p7 = pnand %p1013_p6, %p1007_p3 }
   0xf   :  { %1017 = shalt.err (!%p1014_p7)
}
  0x10   :  { %s1045_s25 = smov 32   ;;  %s1046_s26 = smov 2  }
  0x11   :  { %22 = dma.hbm_to_vmem [thread:$0]  %s1195_s0, 256, %s17_s16, [#allocation4], %s1045_s25, %s1045_s25, %s1046_s26  }
  0x12   :  { %1040 = dma.done.wait [#allocation4], 256  }
  0x13   :  { %1041 = vsyncadd [#allocation4], 4294967040  ;;  %vm36_vm0 = vcmask 254976   ;;  %v1047_v0 = vmov 0.0|0.0   ;;  %vm1048_vm1 = vmmov 0   ;;  %v1049_v1 = vmov 0.0  }
  0x14   :  { %919 = vmatprep.subr.bf16.mxu0 %v1047_v0  ;;  %828 = vmatprep.mubr.msk.f32.mxu0 %vm1048_vm1, %v1049_v1  ;;  %37 = vst.msk [vmem:[#allocation2] sm:$0x3] %vm36_vm0, %v1049_v1  ;;  %v38_v2 = vld [vmem:[%s1196_s1] sm:$0xff]  ;;  %v39_v3 = vld [vmem:[%s1196_s1 + $0x8] sm:$0xff]  ;;  %v40_v4 = vld [vmem:[%s1196_s1 + $0x10] sm:$0xff]  ;;  %vm44_vm2 = vcmask 261120  }
  0x15   :  { %925 = vmatprep.subr.bf16.mxu1 %v1047_v0  ;;  %839 = vmatprep.mubr.msk.f32.mxu1 %vm1048_vm1, %v1049_v1  ;;  %v1105_v5 = vpack.c.bf16 %v39_v3, %v38_v2  ;;  %v41_v6 = vld [vmem:[%s1196_s1 + $0x18] sm:$0xff]  ;;  %v43_v9 = vld [vmem:[#allocation3] sm:$0x3]  ;;  %v121_v14 = vld [vmem:[#allocation3 + $0x2] sm:$0x3]  ;;  %s1050_s19 = smov [#allocation6]  }
  0x16   :  { %v1111_v7 = vpack.c.bf16 %v41_v6, %v40_v4  ;;  %v198_v19 = vld [vmem:[#allocation3 + $0x4] sm:$0x3]  ;;  %v275_v24 = vld [vmem:[#allocation3 + $0x6] sm:$0x3]  ;;  %v352_v29 = vld [vmem:[#allocation3 + $0x8] sm:$0x3] }
  0x17   :  { %921 = vmatpush3.bf16.msra.mxu0 %v1105_v5  ;;  %927 = vmatpush3.bf16.msra.mxu1 %v1105_v5  ;;  %v429_v34 = vld [vmem:[#allocation3 + $0xa] sm:$0x3]  ;;  %v506_v39 = vld [vmem:[#allocation3 + $0xc] sm:$0x3]  ;;  %v664_v44 = vld [vmem:[%s1197_s2] sm:$0xff]  ;;  %s756_s20 = sshll.u32 %s1050_s19, 4  ;;  %s757_s20 = int_to_ptr.vmem [resolvable:$true] %s756_s20 }
  0x18   :  { %922 = vmatprep.subr.bf16.mxu0 %v1047_v0  ;;  %928 = vmatprep.subr.bf16.mxu1 %v1047_v0  ;;  %v665_v45 = vld [vmem:[%s1197_s2 + $0x8] sm:$0xff]  ;;  %v666_v47 = vld [vmem:[%s1197_s2 + $0x10] sm:$0xff]  ;;  %v667_v48 = vld [vmem:[%s1197_s2 + $0x18] sm:$0xff]  ;;  %vm748_vm3 = vcmask 25600   ;;  %s1018_s2 = scalar_lea.vmem %s757_s20, 32  ;;  %p1023_p9 = scmp.lt.s32.totalorder %s757_s20, %s757_s20 }
  0x19   :  { %v968_v46 = vpack.c.bf16 %v665_v45, %v664_v44  ;;  %v971_v49 = vpack.c.bf16 %v667_v48, %v666_v47  ;;  %v583_v50 = vld [vmem:[#allocation3 + $0xe] sm:$0x3]  ;;  %v773_v55 = vld [vmem:[%s1198_s3] ss:$0 sm:$0xff]  ;;  %p1019_p8 = scmp.ne.s32.totalorder %s757_s20, %s1018_s2  ;;  %p1024_p10 = scmp.lt.s32.totalorder %s1018_s2, %s1018_s2 }
  0x1b   :  { %924 = vmatpush3.bf16.msra.mxu0 %v1111_v7  ;;  %v42_v8 = vld [vmem:[#allocation2] sm:$0x3]  ;;  %930 = vmatpush3.bf16.msra.mxu1 %v1111_v7  ;;  %p1025_p11 = por %p1024_p10, %p1023_p9 }
  0x1c   :  { %931 = vmatprep.subr.bf16.mxu0 %v1047_v0  ;;  %937 = vmatprep.subr.bf16.mxu1 %v1047_v0 }
  0x1d   :  { %p1026_p12 = pnand %p1025_p11, %p1019_p8 }
  0x1e   :  { %829 = vmatmul.mubr.msk.f32.vlgmr.msra.gmra.mrb[0].mxu0 %vm44_vm2, %v42_v8 }
  0x1f   :  { %933 = vmatpush3.bf16.msra.mxu0 %v1105_v5  ;;  %850 = vmatprep.mubr.msk.f32.mxu0 %vm1048_vm1, %v1049_v1 }
  0x20   :  { %934 = vmatprep.subr.bf16.mxu0 %v1047_v0 }
  0x23   :  { %936 = vmatpush3.bf16.msra.mxu0 %v1111_v7 }
  0x24   :  { %943 = vmatprep.subr.bf16.mxu0 %v1047_v0 }
  0xf1   :  { %v114_v10 = vpop.f32.mrb[0].mxu0 }
  0xf2   :  { %v118_v11 = vadd.f32 %v114_v10, %v43_v9  ;;  %v830_v12 = vpop.f32.mrb[1].mxu0 }
  0xf4   :  { %980 = vtanh.f32 %v118_v11 }
  0xfe   :  { %v981_v13 = vpop.eup %980 }
  0xff   :  { %840 = vmatmul.mubr.msk.f32.vlgmr.msra.gmra.mrb[0].mxu1 %vm44_vm2, %v981_v13 }
 0x100   :  { %939 = vmatpush3.bf16.msra.mxu1 %v1105_v5  ;;  %861 = vmatprep.mubr.msk.f32.mxu1 %vm1048_vm1, %v1049_v1 }
 0x101   :  { %940 = vmatprep.subr.bf16.mxu1 %v1047_v0 }
 0x104   :  { %942 = vmatpush3.bf16.msra.mxu1 %v1111_v7 }
 0x105   :  { %949 = vmatprep.subr.bf16.mxu1 %v1047_v0 }
 0x1d2   :  { %v191_v15 = vpop.f32.mrb[0].mxu1 }
 0x1d3   :  { %v195_v16 = vadd.f32 %v191_v15, %v121_v14  ;;  %v841_v17 = vpop.f32.mrb[1].mxu1 }
 0x1d5   :  { %982 = vtanh.f32 %v195_v16 }
 0x1df   :  { %v983_v18 = vpop.eup %982 }
 0x1e0   :  { %851 = vmatmul.mubr.msk.f32.vlgmr.msra.gmra.mrb[2].mxu0 %vm44_vm2, %v983_v18 }
 0x1e1   :  { %945 = vmatpush3.bf16.msra.mxu0 %v1105_v5  ;;  %872 = vmatprep.mubr.msk.f32.mxu0 %vm1048_vm1, %v1049_v1 }
 0x1e2   :  { %946 = vmatprep.subr.bf16.mxu0 %v1047_v0 }
 0x1e5   :  { %948 = vmatpush3.bf16.msra.mxu0 %v1111_v7 }
 0x1e6   :  { %955 = vmatprep.subr.bf16.mxu0 %v1047_v0 }
 0x2b3   :  { %v268_v20 = vpop.f32.mrb[2].mxu0 }
 0x2b4   :  { %v272_v21 = vadd.f32 %v268_v20, %v198_v19  ;;  %v852_v22 = vpop.f32.mrb[3].mxu0 }
 0x2b6   :  { %984 = vtanh.f32 %v272_v21 }
 0x2c0   :  { %v985_v23 = vpop.eup %984 }
 0x2c1   :  { %862 = vmatmul.mubr.msk.f32.vlgmr.msra.gmra.mrb[2].mxu1 %vm44_vm2, %v985_v23 }
 0x2c2   :  { %951 = vmatpush3.bf16.msra.mxu1 %v1105_v5  ;;  %883 = vmatprep.mubr.msk.f32.mxu1 %vm1048_vm1, %v1049_v1 }
 0x2c3   :  { %952 = vmatprep.subr.bf16.mxu1 %v1047_v0 }
 0x2c6   :  { %954 = vmatpush3.bf16.msra.mxu1 %v1111_v7 }
 0x2c7   :  { %961 = vmatprep.subr.bf16.mxu1 %v1047_v0 }
 0x394   :  { %v345_v25 = vpop.f32.mrb[2].mxu1 }
 0x395   :  { %v349_v26 = vadd.f32 %v345_v25, %v275_v24  ;;  %v863_v27 = vpop.f32.mrb[3].mxu1 }
 0x397   :  { %986 = vtanh.f32 %v349_v26 }
 0x3a1   :  { %v987_v28 = vpop.eup %986 }
 0x3a2   :  { %873 = vmatmul.mubr.msk.f32.vlgmr.msra.gmra.mrb[4].mxu0 %vm44_vm2, %v987_v28 }
 0x3a3   :  { %957 = vmatpush3.bf16.msra.mxu0 %v1105_v5  ;;  %894 = vmatprep.mubr.msk.f32.mxu0 %vm1048_vm1, %v1049_v1 }
 0x3a4   :  { %958 = vmatprep.subr.bf16.mxu0 %v1047_v0 }
 0x3a7   :  { %960 = vmatpush3.bf16.msra.mxu0 %v1111_v7 }
 0x3a8   :  { %967 = vmatprep.subr.bf16.mxu0 %v1047_v0 }
 0x475   :  { %v422_v30 = vpop.f32.mrb[4].mxu0 }
 0x476   :  { %v426_v31 = vadd.f32 %v422_v30, %v352_v29  ;;  %v874_v32 = vpop.f32.mrb[5].mxu0 }
 0x478   :  { %988 = vtanh.f32 %v426_v31 }
 0x482   :  { %v989_v33 = vpop.eup %988 }
 0x483   :  { %884 = vmatmul.mubr.msk.f32.vlgmr.msra.gmra.mrb[4].mxu1 %vm44_vm2, %v989_v33 }
 0x484   :  { %963 = vmatpush3.bf16.msra.mxu1 %v1105_v5  ;;  %905 = vmatprep.mubr.msk.f32.mxu1 %vm1048_vm1, %v1049_v1 }
 0x485   :  { %964 = vmatprep.subr.bf16.mxu1 %v1047_v0 }
 0x488   :  { %966 = vmatpush3.bf16.msra.mxu1 %v1111_v7 }
 0x556   :  { %v499_v35 = vpop.f32.mrb[4].mxu1 }
 0x557   :  { %v503_v36 = vadd.f32 %v499_v35, %v429_v34  ;;  %v885_v37 = vpop.f32.mrb[5].mxu1 }
 0x559   :  { %990 = vtanh.f32 %v503_v36 }
 0x563   :  { %v991_v38 = vpop.eup %990 }
 0x564   :  { %895 = vmatmul.mubr.msk.f32.vlgmr.msra.gmra.mrb[6].mxu0 %vm44_vm2, %v991_v38 }
 0x565   :  { %916 = vmatprep.mubr.msk.f32.mxu0 %vm1048_vm1, %v1049_v1  ;;  %969 = vmatpush3.bf16.msra.mxu0 %v968_v46 }
 0x566   :  { %970 = vmatprep.subr.bf16.mxu0 %v1047_v0 }
 0x569   :  { %972 = vmatpush3.bf16.msra.mxu0 %v971_v49 }
 0x637   :  { %v576_v40 = vpop.f32.mrb[6].mxu0 }
 0x638   :  { %v580_v41 = vadd.f32 %v576_v40, %v506_v39  ;;  %v896_v42 = vpop.f32.mrb[7].mxu0 }
 0x63a   :  { %992 = vtanh.f32 %v580_v41 }
 0x644   :  { %v993_v43 = vpop.eup %992 }
 0x645   :  { %906 = vmatmul.mubr.msk.f32.vlgmr.msra.gmra.mrb[6].mxu1 %vm44_vm2, %v993_v43 }
 0x718   :  { %v653_v51 = vpop.f32.mrb[6].mxu1 }
 0x719   :  { %v657_v52 = vadd.f32 %v653_v51, %v583_v50  ;;  %v907_v53 = vpop.f32.mrb[7].mxu1 }
 0x71b   :  { %994 = vtanh.f32 %v657_v52 }
 0x725   :  { %v995_v54 = vpop.eup %994 }
 0x726   :  { %660 = vst.msk [vmem:[#allocation2] sm:$0x3] %vm36_vm0, %v995_v54  ;;  %917 = vmatmul.mubr.msk.f32.vlgmr.msra.gmra.mrb[8].mxu0 %vm44_vm2, %v995_v54 }
 0x7f9   :  { %v744_v56 = vpop.f32.mrb[8].mxu0 }
 0x7fa   :  { %v745_v57 = vadd.f32 %v773_v55, %v744_v56  ;;  %v918_v58 = vpop.f32.mrb[9].mxu0 }
 0x7fc   :  { %749 = vst.msk [vmem:[#allocation6] sm:$0x3] %vm748_vm3, %v745_v57 }
 0x7fd   :  { %1029 = shalt.err (!%p1026_p12)
}
 0x7fe   :  { %s1030_s23 = scalar_lea.hbm %s1199_s4, 32 }
 0x7ff   :  { %p1031_p13 = scmp.ne.s32.totalorder %s1199_s4, %s1030_s23  ;;  %p1034_p0 = scmp.lt.u32.totalorder %s1030_s23, %s1199_s4 }
 0x801   :  { %p1036_p1 = pnand %p1034_p0, %p1031_p13 }
 0x803   :  { %1039 = shalt.err (!%p1036_p1)
}
 0x804   :  { %759 = dma.vmem_to_hbm [thread:$0]  %s757_s20, 32, %s1199_s4, [#allocation5]  }
 0x805   :  { %1042 = dma.done.wait [#allocation5], 32  }
 0x806   :  { %1043 = vsyncadd [#allocation5], 4294967264 }
 0x807   :  { %763 = vsyncpa [#allocation4], 1 }
 0x808   :  { %764 = vsyncpa [#allocation5], 1 }

</bundles_post_ra>
